<compile_context>
chip_gen: v7x
topology: tpu7x:2x2x1
jax: 0.10.0
libtpu: 0.0.40
codegen_flags: <defaults>
</compile_context>

<pallas_src>
import math

import jax
import jax.numpy as jnp
from jax import lax
from jax.experimental import pallas as pl
from jax.experimental.pallas import tpu as pltpu


# --------------------------------------------------------------------------- #
# Pallas kernels
# --------------------------------------------------------------------------- #
def _ssd_head_matmul_kernel(p_ref, w_ref, b_ref, o_ref):
    """Fused loc+conf SSD head as a single im2col matmul.

    p_ref: (M, 9*C)   im2col patches, M = B*H*W (batch folded into M)
    w_ref: (9*C, N)   fused [loc | conf] weights (HWIO flattened row-major)
    b_ref: (1, N)     fused bias
    o_ref: (M, N)     raw head output; columns = [loc (Lout) | conf (Kout)]
    """
    acc = jnp.dot(p_ref[...], w_ref[...], preferred_element_type=jnp.float32)
    o_ref[...] = (acc + b_ref[...]).astype(o_ref.dtype)


def ssd_head_matmul(patches, w_fused, b_fused):
    """One MXU matmul per head. Whole arrays fit trivially in VMEM (no grid)."""
    M, _ = patches.shape
    N = w_fused.shape[1]
    # TODO(synk): for real SSD shapes (e.g. 38x38x512, ~81 classes) add a grid
    # tiling M and the class/N dimension and set vmem_limit_bytes explicitly.
    vmem = pl.BlockSpec(memory_space=pltpu.MemorySpace.VMEM)
    return pl.pallas_call(
        _ssd_head_matmul_kernel,
        out_shape=jax.ShapeDtypeStruct((M, N), jnp.float32),
        in_specs=[vmem, vmem, vmem],
        out_specs=vmem,
    )(patches, w_fused, b_fused)


def _softmax_classes_kernel(x_ref, o_ref):
    """Numerically stable softmax over the class axis (axis=1).

    x_ref/o_ref: (B, NC, T) -- priors on the lane axis (lane-dense stores),
    reduction over the small sublane (class) axis.
    """
    x = x_ref[...].astype(jnp.float32)
    m = jnp.max(x, axis=1, keepdims=True)
    e = jnp.exp(x - m)
    s = jnp.sum(e, axis=1, keepdims=True)
    o_ref[...] = (e / s).astype(o_ref.dtype)


def softmax_classes(conf_btc):
    """conf_btc: (B, T, NC) -> softmax over the NC (class) axis."""
    B, T, NC = conf_btc.shape
    x = jnp.transpose(conf_btc, (0, 2, 1))           # (B, NC, T): lane-dense
    vmem = pl.BlockSpec(memory_space=pltpu.MemorySpace.VMEM)
    y = pl.pallas_call(
        _softmax_classes_kernel,
        out_shape=jax.ShapeDtypeStruct((B, NC, T), conf_btc.dtype),
        in_specs=[vmem],
        out_specs=vmem,
    )(x)
    return jnp.transpose(y, (0, 2, 1))                # back to (B, T, NC)


# --------------------------------------------------------------------------- #
# Glue: im2col (pad + 9 slices + concat fuse in XLA, feeds the matmul kernel)
# --------------------------------------------------------------------------- #
def im2col_3x3(x_nhwc):
    """3x3/pad=1 im2col. Returns (B*H*W, 9*C); column order = (kh, kw, C)."""
    B, H, W, C = x_nhwc.shape
    xp = jnp.pad(x_nhwc, ((0, 0), (1, 1), (1, 1), (0, 0)))
    cols = [xp[:, kh:kh + H, kw:kw + W, :] for kh in range(3) for kw in range(3)]
    patches = jnp.concatenate(cols, axis=-1)          # (B, H, W, 9*C)
    return patches.reshape(B * H * W, 9 * C)


# --------------------------------------------------------------------------- #
# PriorBox (Caffe/SSD style, no learned parameters) -- plain JAX glue
# --------------------------------------------------------------------------- #
def prior_box(feat_hw, img_hw, min_size, max_size, aspect_ratios,
              flip, clip, variance, step):
    fh, fw = feat_hw
    ih, iw = img_hw
    step_h = float(step) if step else ih / fh
    step_w = float(step) if step else iw / fw
    offset = 0.5

    ws = [float(min_size)]
    hs = [float(min_size)]
    s2 = math.sqrt(float(min_size) * float(max_size))
    ws.append(s2)
    hs.append(s2)
    for ar in aspect_ratios:
        sq = math.sqrt(ar)
        ws.append(min_size * sq)
        hs.append(min_size / sq)
        if flip:
            ws.append(min_size / sq)
            hs.append(min_size * sq)
    ws = jnp.asarray(ws, jnp.float32)
    hs = jnp.asarray(hs, jnp.float32)
    num_priors = ws.shape[0]

    cy = (jnp.arange(fh, dtype=jnp.float32)[:, None, None] + offset) * step_h
    cx = (jnp.arange(fw, dtype=jnp.float32)[None, :, None] + offset) * step_w
    xmin = (cx - ws / 2.0) / iw
    ymin = (cy - hs / 2.0) / ih
    xmax = (cx + ws / 2.0) / iw
    ymax = (cy + hs / 2.0) / ih
    boxes = jnp.stack(jnp.broadcast_arrays(xmin, ymin, xmax, ymax), axis=-1)
    if clip:
        boxes = jnp.clip(boxes, 0.0, 1.0)
    boxes = boxes.reshape(1, 1, -1)
    var = jnp.tile(jnp.asarray(variance, jnp.float32),
                   fh * fw * num_priors).reshape(1, 1, -1)
    return jnp.concatenate([boxes, var], axis=1)   # (1, 2, fh*fw*num_priors*4)


# --------------------------------------------------------------------------- #
# SSDDetectionOutput wrapper
# --------------------------------------------------------------------------- #
class SSDDetectionOutputPallas:
    def __init__(self, num_input_features, num_classes, config, key):
        self.num_classes = num_classes
        self.config = config
        self.params = []
        for i, cin in enumerate(num_input_features):
            num_prior = 2 + 2 * len(config["aspect_ratios"][i])
            lout = num_prior * 4
            kout = num_prior * num_classes
            key, k1, k2, k3, k4 = jax.random.split(key, 5)
            scale = 1.0 / math.sqrt(cin * 9)   # Conv2d-style uniform fan-in init
            wl = jax.random.uniform(k1, (3, 3, cin, lout), jnp.float32, -scale, scale)
            bl = jax.random.uniform(k2, (lout,), jnp.float32, -scale, scale)
            wc = jax.random.uniform(k3, (3, 3, cin, kout), jnp.float32, -scale, scale)
            bc = jax.random.uniform(k4, (kout,), jnp.float32, -scale, scale)
            # Pre-reshaped fused 2D weights: one aligned VMEM block, one matmul.
            w_fused = jnp.concatenate(
                [wl.reshape(9 * cin, lout), wc.reshape(9 * cin, kout)], axis=1)
            b_fused = jnp.concatenate([bl, bc])[None, :]
            self.params.append((w_fused, b_fused, lout, kout))

    def __call__(self, source_features_nchw, img_tensor_nchw):
        cfg = self.config
        B = source_features_nchw[0].shape[0]
        ih, iw = img_tensor_nchw.shape[2], img_tensor_nchw.shape[3]

        locs, confs, priors = [], [], []
        for i, x_nchw in enumerate(source_features_nchw):
            x = jnp.transpose(x_nchw, (0, 2, 3, 1))            # NCHW -> NHWC
            _, H, W, _ = x.shape
            w_fused, b_fused, lout, kout = self.params[i]
            patches = im2col_3x3(x)                            # (B*H*W, 9*C)
            out = ssd_head_matmul(patches, w_fused, b_fused)   # (B*H*W, Lout+Kout)
            locs.append(out[:, :lout].reshape(B, -1))          # (h, w, prior, 4) order
            confs.append(out[:, lout:].reshape(B, -1))         # (h, w, prior, class)
            priors.append(prior_box((H, W), (ih, iw),
                                    cfg["min_sizes"][i], cfg["max_sizes"][i],
                                    cfg["aspect_ratios"][i], cfg["flip"],
                                    cfg["clip"], cfg["variance"], cfg["steps"][i]))

        loc = jnp.concatenate(locs, axis=1)
        conf = jnp.concatenate(confs, axis=1)
        conf3 = conf.reshape(B, -1, self.num_classes)
        conf_softmax = softmax_classes(conf3)
        priors_cat = jnp.concatenate(priors, axis=2)

        # Training / loss_inference branch of SSDDetectionOutput.forward.
        # TODO(synk): DetectionOutput (box decode + per-class NMS + top-k) is
        # data-dependent sorting/suppression with no clean Pallas equivalent.
        return (loc.reshape(B, -1, 4), conf3,
                priors_cat.reshape(1, 2, -1, 4), conf_softmax)


# --------------------------------------------------------------------------- #
# Pure-JAX reference (lax.conv + jax.nn.softmax) for correctness checking
# --------------------------------------------------------------------------- #
def _reference_forward(model, source_features_nchw):
    B = source_features_nchw[0].shape[0]
    locs, confs = [], []
    for i, x_nchw in enumerate(source_features_nchw):
        x = jnp.transpose(x_nchw, (0, 2, 3, 1))
        C = x.shape[-1]
        w_fused, b_fused, lout, kout = model.params[i]
        w4 = w_fused.reshape(3, 3, C, lout + kout)
        out = lax.conv_general_dilated(
            x, w4, window_strides=(1, 1), padding="SAME",
            dimension_numbers=("NHWC", "HWIO", "NHWC"),
            precision=lax.Precision.HIGHEST) + b_fused.reshape(1, 1, 1, -1)
        locs.append(out[..., :lout].reshape(B, -1))
        confs.append(out[..., lout:].reshape(B, -1))
    loc = jnp.concatenate(locs, axis=1)
    conf = jnp.concatenate(confs, axis=1)
    conf3 = conf.reshape(B, -1, model.num_classes)
    return loc.reshape(B, -1, 4), conf3, jax.nn.softmax(conf3, axis=-1)


# --------------------------------------------------------------------------- #
# Demo
# --------------------------------------------------------------------------- #
if __name__ == "__main__":
    key = jax.random.PRNGKey(0)
    config = dict(
        min_sizes=[8.0, 16.0],
        max_sizes=[16.0, 32.0],
        aspect_ratios=[[2.0], [2.0, 3.0]],
        steps=[8, 16],
        variance=[0.1, 0.1, 0.2, 0.2],
        flip=True,
        clip=True,
    )
    num_input_features = [4, 8]
    num_classes = 4
    B = 2

    key, kf0, kf1, kimg, kparams = jax.random.split(key, 5)
    feat0 = jax.random.normal(kf0, (B, 4, 8, 8), jnp.float32)    # NCHW
    feat1 = jax.random.normal(kf1, (B, 8, 4, 4), jnp.float32)    # NCHW
    img = jax.random.normal(kimg, (B, 3, 64, 64), jnp.float32)   # NCHW

    model = SSDDetectionOutputPallas(num_input_features, num_classes, config, kparams)
    loc, conf, priors, conf_softmax = model([feat0, feat1], img)
    jax.block_until_ready((loc, conf, priors, conf_softmax))

    # sanity: 8*8*4 + 4*4*6 = 352 prior boxes
    assert loc.shape == (B, 352, 4)
    assert conf.shape == (B, 352, num_classes)
    assert priors.shape == (1, 2, 352, 4)
    assert conf_softmax.shape == (B, 352, num_classes)
    assert bool(jnp.all(jnp.isfinite(loc))) and bool(jnp.all(jnp.isfinite(conf_softmax)))
    assert bool(jnp.all(jnp.isfinite(priors)))

    # numerics vs pure-JAX reference (tolerance covers MXU pass precision)
    loc_ref, conf_ref, sm_ref = _reference_forward(model, [feat0, feat1])
    assert bool(jnp.allclose(loc, loc_ref, atol=2e-2, rtol=2e-2))
    assert bool(jnp.allclose(conf, conf_ref, atol=2e-2, rtol=2e-2))
    assert bool(jnp.allclose(conf_softmax, sm_ref, atol=2e-2, rtol=2e-2))

    print("KERNEL_OK")
</pallas_src>

<mosaic_0001>
module attributes {stable_mosaic.version = 11 : i64} {
  func.func @_ssd_head_matmul_kernel(%arg0: memref<128x36xf32, #tpu.memory_space<vmem>>, %arg1: memref<36x32xf32, #tpu.memory_space<vmem>>, %arg2: memref<1x32xf32, #tpu.memory_space<vmem>>, %arg3: memref<128x32xf32, #tpu.memory_space<vmem>>) attributes {dimension_semantics = [], scalar_prefetch = 0 : i64, scratch_operands = 0 : i64, tpu.core_type = #tpu.core_type<tc>} {
    %c0 = arith.constant 0 : index
    %c0_0 = arith.constant 0 : index
    %0 = vector.load %arg0[%c0, %c0_0] : memref<128x36xf32, #tpu.memory_space<vmem>>, vector<128x36xf32>
    %c0_1 = arith.constant 0 : index
    %c0_2 = arith.constant 0 : index
    %1 = vector.load %arg1[%c0_1, %c0_2] : memref<36x32xf32, #tpu.memory_space<vmem>>, vector<36x32xf32>
    %cst = arith.constant dense<0.000000e+00> : vector<128x32xf32>
    %2 = tpu.matmul %0, %1, %cst {dimension_numbers = #tpu.dot_dimension_numbers<[1], [0], [0], [1], [0, 0, 1, 1], [], []>} : vector<128x36xf32>, vector<36x32xf32>, vector<128x32xf32> -> vector<128x32xf32>
    %c0_3 = arith.constant 0 : index
    %c0_4 = arith.constant 0 : index
    %3 = vector.load %arg2[%c0_3, %c0_4] : memref<1x32xf32, #tpu.memory_space<vmem>>, vector<1x32xf32>
    %4 = vector.broadcast %3 : vector<1x32xf32> to vector<128x32xf32>
    %5 = arith.addf %2, %4 : vector<128x32xf32>
    %c0_5 = arith.constant 0 : index
    %c0_6 = arith.constant 0 : index
    %6 = vector.load %arg3[%c0_5, %c0_6] : memref<128x32xf32, #tpu.memory_space<vmem>>, vector<128x32xf32>
    tpu.vector_store %arg3[%c0_5, %c0_6], %5 {strides = array<i32>} : memref<128x32xf32, #tpu.memory_space<vmem>>, vector<128x32xf32>,
    return
  }
}

</mosaic_0001>

<bundles_post_ra>
// kernel: tpu_custom_call.1
= control target key start
LH: loop header
LB: loop body
LE: loop exit
PB: predicated region body
PF: predicated region fallthrough
CT: control target
= control target key end

     0   :  { %vm42_vm0 = vcmask 293888   ;;  %vm91_vm1 = vcmask 1043456   ;;  %vm240_vm2 = vcmask 261120   ;;  %s514_s1 = inlined_call_operand.vmem [shape: f32[36,32], index: 1, kind: input, shape index: {}]   ;;  %s515_s0 = inlined_call_operand.vmem [shape: f32[128,36], index: 0, kind: input, shape index: {}]   ;;  %s516_s2 = inlined_call_operand.vmem [shape: f32[1,32], index: 2, kind: input, shape index: {}]   ;;  %s517_s3 = inlined_call_operand.vmem [shape: f32[128,32], index: 3, kind: output, shape index: {}]  }
   0x1   :  { %v30_v0 = vld [vmem:[%s514_s1] sm:$0xff]  ;;  %v31_v1 = vld [vmem:[%s514_s1 + $0x8] sm:$0xff]  ;;  %v32_v2 = vld [vmem:[%s514_s1 + $0x10] sm:$0xff] }
   0x2   :  { %v334_v3 = vpack.c.bf16 %v31_v1, %v30_v0  ;;  %v33_v4 = vld [vmem:[%s514_s1 + $0x18] sm:$0xff]  ;;  %v14_v5 = vld [vmem:[%s515_s0] sm:$0xff]  ;;  %v15_v9 = vld [vmem:[%s515_s0 + $0x8] sm:$0xff] }
   0x3   :  { %v338_v6 = vpack.c.bf16 %v33_v4, %v32_v2  ;;  %310 = vmatprep.mubr.msk.f32.mxu0 %vm42_vm0, %v14_v5  ;;  %v22_v7 = vld [vmem:[%s515_s0 + $0x40] sm:$0xff]  ;;  %v23_v10 = vld [vmem:[%s515_s0 + $0x48] sm:$0xff]  ;;  %v16_v11 = vld [vmem:[%s515_s0 + $0x10] sm:$0xff] }
   0x4   :  { %335 = vmatprep.subr.bf16.mxu0 %v334_v3  ;;  %342 = vmatprep.subr.bf16.mxu1 %v334_v3  ;;  %v34_v8 = vld [vmem:[%s514_s1 + $0x20] sm:$0xf]  ;;  %v24_v12 = vld [vmem:[%s515_s0 + $0x50] sm:$0xff]  ;;  %v17_v13 = vld [vmem:[%s515_s0 + $0x18] sm:$0xff] }
   0x5   :  { %337 = vmatpush3.bf16.msra.mxu0 %v334_v3  ;;  %345 = vmatpush3.bf16.msra.mxu1 %v334_v3  ;;  %v25_v14 = vld [vmem:[%s515_s0 + $0x58] sm:$0xff]  ;;  %v18_v15 = vld [vmem:[%s515_s0 + $0x20] sm:$0xff]  ;;  %v19_v17 = vld [vmem:[%s515_s0 + $0x28] sm:$0xff] }
   0x6   :  { %339 = vmatprep.subr.bf16.mxu0 %v338_v6  ;;  %343 = vmatprep.subr.bf16.mxu1 %v338_v6  ;;  %v26_v16 = vld [vmem:[%s515_s0 + $0x60] sm:$0xff]  ;;  %v27_v18 = vld [vmem:[%s515_s0 + $0x68] sm:$0xff]  ;;  %v20_v19 = vld [vmem:[%s515_s0 + $0x30] sm:$0xff] }
   0x7   :  { %322 = vmatprep.mubr.msk.f32.mxu1 %vm42_vm0, %v22_v7  ;;  %v28_v20 = vld [vmem:[%s515_s0 + $0x70] sm:$0xff]  ;;  %v21_v21 = vld [vmem:[%s515_s0 + $0x38] sm:$0xff]  ;;  %v261_v23 = vld [vmem:[%s516_s2] ss:$0 sm:$0xff] }
   0x8   :  { %v29_v22 = vld [vmem:[%s515_s0 + $0x78] sm:$0xff] }
   0x9   :  { %341 = vmatpush3.bf16.msra.mxu0 %v338_v6  ;;  %346 = vmatpush3.bf16.msra.mxu1 %v338_v6 }
   0xa   :  { %308 = vmatprep.subr.msk.mxu0 %vm91_vm1, %v34_v8  ;;  %344 = vmatprep.subr.msk.mxu1 %vm91_vm1, %v34_v8 }
   0xd   :  { %309 = vmatpush3.msk.msra.mxu0 %vm91_vm1, %v34_v8  ;;  %347 = vmatpush3.msk.msra.mxu1 %vm91_vm1, %v34_v8 }
   0xe   :  { %311 = vmatmul.mubr.msk.f32.vlgmr.msra.gmra.mrb[0].mxu0 %vm42_vm0, %v15_v9  ;;  %323 = vmatmul.mubr.msk.f32.vlgmr.msra.gmra.mrb[0].mxu1 %vm42_vm0, %v23_v10 }
   0xf   :  { %313 = vmatprep.mubr.msk.f32.mxu0 %vm42_vm0, %v16_v11  ;;  %325 = vmatprep.mubr.msk.f32.mxu1 %vm42_vm0, %v24_v12 }
  0x12   :  { %314 = vmatmul.mubr.msk.f32.gmra.mrb[2].mxu0 %vm42_vm0, %v17_v13  ;;  %326 = vmatmul.mubr.msk.f32.gmra.mrb[2].mxu1 %vm42_vm0, %v25_v14 }
  0x13   :  { %316 = vmatprep.mubr.msk.f32.mxu0 %vm42_vm0, %v18_v15  ;;  %328 = vmatprep.mubr.msk.f32.mxu1 %vm42_vm0, %v26_v16 }
  0x16   :  { %317 = vmatmul.mubr.msk.f32.gmra.mrb[4].mxu0 %vm42_vm0, %v19_v17  ;;  %329 = vmatmul.mubr.msk.f32.gmra.mrb[4].mxu1 %vm42_vm0, %v27_v18 }
  0x17   :  { %319 = vmatprep.mubr.msk.f32.mxu0 %vm42_vm0, %v20_v19  ;;  %331 = vmatprep.mubr.msk.f32.mxu1 %vm42_vm0, %v28_v20 }
  0x1a   :  { %320 = vmatmul.mubr.msk.f32.gmra.mrb[6].mxu0 %vm42_vm0, %v21_v21  ;;  %332 = vmatmul.mubr.msk.f32.gmra.mrb[6].mxu1 %vm42_vm0, %v29_v22 }
  0xe1   :  { %v312_v24 = vpop.f32.mrb[0].mxu0  ;;  %v324_v25 = vpop.f32.mrb[0].mxu1 }
  0xe2   :  { %v167_v26 = vadd.f32 %v312_v24, %v261_v23  ;;  %v207_v27 = vadd.f32 %v324_v25, %v261_v23  ;;  %v161_v28 = vpop.f32.mrb[1].mxu0  ;;  %v201_v29 = vpop.f32.mrb[1].mxu1 }
  0xe3   :  { %v162_v30 = vadd.f32 %v261_v23, %v161_v28  ;;  %v202_v31 = vadd.f32 %v261_v23, %v201_v29 }
  0xe4   :  { %242 = vst.msk [vmem:[%s517_s3 + $0x8] sm:$0xff] %vm240_vm2, %v167_v26  ;;  %250 = vst.msk [vmem:[%s517_s3 + $0x48] sm:$0xff] %vm240_vm2, %v207_v27 }
  0xe5   :  { %241 = vst.msk [vmem:[%s517_s3] sm:$0xff] %vm240_vm2, %v162_v30  ;;  %249 = vst.msk [vmem:[%s517_s3 + $0x40] sm:$0xff] %vm240_vm2, %v202_v31  ;;  %v315_v32 = vpop.f32.mrb[2].mxu0  ;;  %v327_v33 = vpop.f32.mrb[2].mxu1 }
  0xe6   :  { %v177_v34 = vadd.f32 %v315_v32, %v261_v23  ;;  %v217_v35 = vadd.f32 %v327_v33, %v261_v23  ;;  %v171_v36 = vpop.f32.mrb[3].mxu0  ;;  %v211_v37 = vpop.f32.mrb[3].mxu1 }
  0xe7   :  { %v172_v38 = vadd.f32 %v261_v23, %v171_v36  ;;  %v212_v39 = vadd.f32 %v261_v23, %v211_v37 }
  0xe8   :  { %244 = vst.msk [vmem:[%s517_s3 + $0x18] sm:$0xff] %vm240_vm2, %v177_v34  ;;  %252 = vst.msk [vmem:[%s517_s3 + $0x58] sm:$0xff] %vm240_vm2, %v217_v35 }
  0xe9   :  { %243 = vst.msk [vmem:[%s517_s3 + $0x10] sm:$0xff] %vm240_vm2, %v172_v38  ;;  %251 = vst.msk [vmem:[%s517_s3 + $0x50] sm:$0xff] %vm240_vm2, %v212_v39  ;;  %v318_v40 = vpop.f32.mrb[4].mxu0  ;;  %v330_v41 = vpop.f32.mrb[4].mxu1 }
  0xea   :  { %v187_v42 = vadd.f32 %v318_v40, %v261_v23  ;;  %v227_v43 = vadd.f32 %v330_v41, %v261_v23  ;;  %v181_v44 = vpop.f32.mrb[5].mxu0  ;;  %v221_v45 = vpop.f32.mrb[5].mxu1 }
  0xeb   :  { %v182_v46 = vadd.f32 %v261_v23, %v181_v44  ;;  %v222_v47 = vadd.f32 %v261_v23, %v221_v45 }
  0xec   :  { %246 = vst.msk [vmem:[%s517_s3 + $0x28] sm:$0xff] %vm240_vm2, %v187_v42  ;;  %254 = vst.msk [vmem:[%s517_s3 + $0x68] sm:$0xff] %vm240_vm2, %v227_v43 }
  0xed   :  { %245 = vst.msk [vmem:[%s517_s3 + $0x20] sm:$0xff] %vm240_vm2, %v182_v46  ;;  %253 = vst.msk [vmem:[%s517_s3 + $0x60] sm:$0xff] %vm240_vm2, %v222_v47  ;;  %v321_v48 = vpop.f32.mrb[6].mxu0  ;;  %v333_v49 = vpop.f32.mrb[6].mxu1 }
  0xee   :  { %v197_v50 = vadd.f32 %v321_v48, %v261_v23  ;;  %v237_v51 = vadd.f32 %v333_v49, %v261_v23  ;;  %v191_v52 = vpop.f32.mrb[7].mxu0  ;;  %v231_v53 = vpop.f32.mrb[7].mxu1 }
  0xef   :  { %v192_v54 = vadd.f32 %v261_v23, %v191_v52  ;;  %v232_v55 = vadd.f32 %v261_v23, %v231_v53 }
  0xf0   :  { %248 = vst.msk [vmem:[%s517_s3 + $0x38] sm:$0xff] %vm240_vm2, %v197_v50  ;;  %256 = vst.msk [vmem:[%s517_s3 + $0x78] sm:$0xff] %vm240_vm2, %v237_v51 }
  0xf1   :  { %247 = vst.msk [vmem:[%s517_s3 + $0x30] sm:$0xff] %vm240_vm2, %v192_v54  ;;  %255 = vst.msk [vmem:[%s517_s3 + $0x70] sm:$0xff] %vm240_vm2, %v232_v55 }

</bundles_post_ra>
